<compile_context>
chip_gen: v5e
topology: v5e:2x2
jax: 0.10.0
libtpu: 0.0.40
codegen_flags: <defaults>
</compile_context>

<pallas_src>
import jax
import jax.numpy as jnp
import numpy as np
from jax.experimental import pallas as pl
from jax.experimental.pallas import tpu as pltpu


def _round_up(x: int, m: int) -> int:
    return ((x + m - 1) // m) * m


def _vmem_capacity_bytes() -> int:
    """Per-TensorCore VMEM capacity; conservative fallback if not queryable."""
    try:
        cap = int(pltpu.get_tpu_info().vmem_capacity_bytes)
        if cap > 0:
            return cap
    except Exception:
        pass
    return 64 * 2**20  # v7x per-TC capacity (most restrictive generation)


def actor_kernel(adim_ref, obs_ref, wp_ref, bp_ref, w_ref, b_ref, out_ref):
    f32 = jnp.float32
    bf16 = jnp.bfloat16

    # preprocess stand-in: h = relu(obs @ Wp + bp); MXU in bf16, f32 accumulate.
    h = jnp.dot(obs_ref[...].astype(bf16), wp_ref[...], preferred_element_type=f32)
    h = jnp.maximum(h + bp_ref[...], 0.0)

    # actor head: logits = h @ W + b
    logits = jnp.dot(h.astype(bf16), w_ref[...], preferred_element_type=f32) + b_ref[...]

    # Mask columns >= per-sample action_dim with a large-negative finite value.
    # exp(-1e30 - m) underflows to exactly 0.0 in f32 whenever at least one
    # action is valid (m finite), so masked probabilities are exactly zero with
    # no second select, and fully-masked padded rows stay NaN-free.
    col = jax.lax.broadcasted_iota(jnp.int32, logits.shape, 1)
    mask = col >= adim_ref[...]
    logits = jnp.where(mask, f32(-1e30), logits)

    # Softmax epilogue in f32; exact divide so every row sums to 1.
    m = jnp.max(logits, axis=-1, keepdims=True)
    e = jnp.exp(logits - m)
    s = jnp.sum(e, axis=-1, keepdims=True)
    out_ref[...] = e / s


def prepare_actor_params(wp, bp, w, b):
    """One-time parameter prep (hoisted out of the per-step forward).

    Weights are stored (in, out), i.e. transposed vs. torch nn.Linear.weight,
    and cast to bfloat16 (MXU-native); biases stay f32 (added after the f32
    matmul accumulation).
    # TODO(synk): for non-toy hidden/action dims, pad the out-dims here (once) to a
    #             generation-dependent granule (128 on v5e, 256 on v6e/v7x).
    """
    bf16, f32 = jnp.bfloat16, jnp.float32
    return (
        jnp.asarray(wp, dtype=bf16),
        jnp.asarray(bp, dtype=f32).reshape(1, -1),
        jnp.asarray(w, dtype=bf16),
        jnp.asarray(b, dtype=f32).reshape(1, -1),
    )


def actor_forward(obs, action_dims, params, *, tb: int = 512, state=None):
    """obs: (B, obs_dim) f32; action_dims: (B,) int; params from prepare_actor_params.

    Returns (probs (B, action_dim) f32, state)."""
    wp, bp, w, b = params
    OBS, H = wp.shape
    H2, A = w.shape
    assert H == H2
    B, OBS2 = obs.shape
    assert OBS == OBS2

    # Batch tile: multiple of 8 sublanes; halve until the grid has >= 2 steps
    # (when B allows it) so the "parallel" axis can use both v7x TensorCores.
    tb = _round_up(max(8, min(tb, _round_up(B, 8))), 8)
    while tb > 8 and pl.cdiv(B, tb) < 2:
        tb = _round_up(max(8, tb // 2), 8)
    Bp = _round_up(B, tb)
    grid = (Bp // tb,)

    obs_f = obs.astype(jnp.float32)
    adim = action_dims.reshape(B, 1).astype(jnp.int32)
    if Bp != B:
        # Pad the batch axis only (no feature-lane padding). Padded rows get
        # adim=0 (fully masked, NaN-free) and are sliced off below.
        obs_f = jnp.pad(obs_f, ((0, Bp - B), (0, 0)))
        adim = jnp.pad(adim, ((0, Bp - B), (0, 0)))

    batch2 = lambda i: (i, 0)
    const2 = lambda i: (0, 0)
    # Full-dim blocks for the small feature axes are legal even when they are
    # not multiples of 128; constant index_maps keep the weights VMEM-resident.
    # TODO(synk): mark the const2 specs pipeline_mode=pl.Buffered(1) if single-buffered
    #             constants are ever needed for VMEM headroom at large hidden dims.
    in_specs = [
        pl.BlockSpec((tb, 1), batch2),      # action_dim (per-sample)
        pl.BlockSpec((tb, OBS), batch2),    # obs (no lane padding)
        pl.BlockSpec((OBS, H), const2),     # Wp  (bf16, resident)
        pl.BlockSpec((1, H), const2),       # bp  (f32, resident)
        pl.BlockSpec((H, A), const2),       # W   (bf16, resident)
        pl.BlockSpec((1, A), const2),       # b   (f32, resident)
    ]
    out_spec = pl.BlockSpec((tb, A), batch2)

    # VMEM budget: double-buffered resident weights + per-step tiles + intermediates.
    weight_bytes = 2 * (wp.size + w.size) + 4 * (bp.size + b.size)
    tile_bytes = 4 * (tb * OBS + tb + tb * A)           # obs + adim + out per step
    interm_bytes = 4 * (tb * H + 2 * tb * A)            # h, logits, e
    needed = 2 * weight_bytes + 2 * 2 * tile_bytes + interm_bytes
    usable = max(16 * 2**20, _vmem_capacity_bytes() - 16 * 2**20)
    vmem_limit = int(min(usable, max(4 * 2**20, needed)))

    cost = pl.CostEstimate(
        flops=2 * B * (OBS * H + H * A),
        transcendentals=B * A,
        bytes_accessed=int(4 * (B * OBS + B + B * A) + weight_bytes),
    )

    probs_p = pl.pallas_call(
        actor_kernel,
        out_shape=jax.ShapeDtypeStruct((Bp, A), jnp.float32),
        grid=grid,
        in_specs=in_specs,
        out_specs=out_spec,
        compiler_params=pltpu.CompilerParams(
            dimension_semantics=("parallel",),
            vmem_limit_bytes=vmem_limit,
        ),
        cost_estimate=cost,
    )(adim, obs_f, wp, bp, w, b)

    probs = probs_p if Bp == B else probs_p[:B]
    return probs, state  # (oput, state) as in the PyTorch module


if __name__ == "__main__":
    # Small, module-consistent shapes.
    B, OBS_DIM, HIDDEN, ACT = 8, 16, 32, 12

    key = jax.random.PRNGKey(0)
    k_obs, k_wp, k_bp, k_w, k_b, k_ad = jax.random.split(key, 6)

    obs = jax.random.normal(k_obs, (B, OBS_DIM), dtype=jnp.float32)
    # per-sample valid action count in [1, ACT]
    action_dims = jax.random.randint(k_ad, (B,), 1, ACT + 1, dtype=jnp.int32)

    # Deterministic parameters (preprocess Linear + actor Linear), stored as (in, out).
    wp = jax.random.normal(k_wp, (OBS_DIM, HIDDEN), dtype=jnp.float32) * 0.1
    bp = jax.random.normal(k_bp, (HIDDEN,), dtype=jnp.float32) * 0.1
    w = jax.random.normal(k_w, (HIDDEN, ACT), dtype=jnp.float32) * 0.1
    b = jax.random.normal(k_b, (ACT,), dtype=jnp.float32) * 0.1

    params = prepare_actor_params(wp, bp, w, b)   # one-time prep (bf16 cast)
    probs, state = actor_forward(obs, action_dims, params)
    probs = jax.block_until_ready(probs)

    # Pure-JAX f32 reference for a sanity check.
    h_ref = jnp.maximum(obs @ wp + bp, 0.0)
    logits_ref = h_ref @ w + b
    col = jnp.arange(ACT)[None, :]
    mask_ref = col >= action_dims[:, None]
    logits_ref = jnp.where(mask_ref, -jnp.inf, logits_ref)
    probs_ref = jax.nn.softmax(logits_ref, axis=-1)

    assert probs.shape == (B, ACT)
    # bf16 matmuls vs f32 reference -> loose elementwise tolerance.
    assert np.allclose(np.asarray(probs), np.asarray(probs_ref), rtol=2e-2, atol=2e-2), (
        np.max(np.abs(np.asarray(probs) - np.asarray(probs_ref))))
    # masked positions must be exactly zero probability
    assert np.all(np.where(np.asarray(mask_ref), np.asarray(probs) == 0.0, True))
    # rows sum to 1 (exact divide in the epilogue -> tight)
    assert np.allclose(np.asarray(probs).sum(-1), 1.0, atol=1e-4)

    print("KERNEL_OK")
</pallas_src>

<mosaic_0001>
module attributes {stable_mosaic.version = 11 : i64} {
  func.func @actor_kernel(%arg0: i32, %arg1: memref<8x1xi32, #tpu.memory_space<vmem>>, %arg2: memref<8x16xf32, #tpu.memory_space<vmem>>, %arg3: memref<16x32xbf16, #tpu.memory_space<vmem>>, %arg4: memref<1x32xf32, #tpu.memory_space<vmem>>, %arg5: memref<32x12xbf16, #tpu.memory_space<vmem>>, %arg6: memref<1x12xf32, #tpu.memory_space<vmem>>, %arg7: memref<8x12xf32, #tpu.memory_space<vmem>>) attributes {dimension_semantics = [#tpu.dimension_semantics<parallel>], iteration_bounds = array<i64: 1>, scalar_prefetch = 0 : i64, scratch_operands = 0 : i64, tpu.core_type = #tpu.core_type<tc>, window_params = [{transform_indices = @transform_0, window_bounds = array<i64: 8, 1>}, {transform_indices = @transform_1, window_bounds = array<i64: 8, 16>}, {pipeline_mode = #tpu.pipeline_mode<synchronous>, transform_indices = @transform_2, window_bounds = array<i64: 16, 32>}, {pipeline_mode = #tpu.pipeline_mode<synchronous>, transform_indices = @transform_3, window_bounds = array<i64: 1, 32>}, {pipeline_mode = #tpu.pipeline_mode<synchronous>, transform_indices = @transform_4, window_bounds = array<i64: 32, 12>}, {pipeline_mode = #tpu.pipeline_mode<synchronous>, transform_indices = @transform_5, window_bounds = array<i64: 1, 12>}, {transform_indices = @transform_6, window_bounds = array<i64: 8, 12>}]} {
    %c0 = arith.constant 0 : index
    %c0_0 = arith.constant 0 : index
    %0 = vector.load %arg2[%c0, %c0_0] : memref<8x16xf32, #tpu.memory_space<vmem>>, vector<8x16xf32>
    %1 = arith.truncf %0 : vector<8x16xf32> to vector<8x16xbf16>
    %c0_1 = arith.constant 0 : index
    %c0_2 = arith.constant 0 : index
    %2 = vector.load %arg3[%c0_1, %c0_2] : memref<16x32xbf16, #tpu.memory_space<vmem>>, vector<16x32xbf16>
    %cst = arith.constant dense<0.000000e+00> : vector<8x32xf32>
    %3 = tpu.matmul %1, %2, %cst {dimension_numbers = #tpu.dot_dimension_numbers<[1], [0], [0], [1], [0, 0, 1, 1], [], []>} : vector<8x16xbf16>, vector<16x32xbf16>, vector<8x32xf32> -> vector<8x32xf32>
    %c0_3 = arith.constant 0 : index
    %c0_4 = arith.constant 0 : index
    %4 = vector.load %arg4[%c0_3, %c0_4] : memref<1x32xf32, #tpu.memory_space<vmem>>, vector<1x32xf32>
    %5 = vector.broadcast %4 : vector<1x32xf32> to vector<8x32xf32>
    %6 = arith.addf %3, %5 : vector<8x32xf32>
    %cst_5 = arith.constant 0.000000e+00 : f32
    %7 = vector.broadcast %cst_5 : f32 to vector<8x32xf32>
    %8 = arith.maximumf %6, %7 : vector<8x32xf32>
    %9 = arith.truncf %8 : vector<8x32xf32> to vector<8x32xbf16>
    %c0_6 = arith.constant 0 : index
    %c0_7 = arith.constant 0 : index
    %10 = vector.load %arg5[%c0_6, %c0_7] : memref<32x12xbf16, #tpu.memory_space<vmem>>, vector<32x12xbf16>
    %cst_8 = arith.constant dense<0.000000e+00> : vector<8x12xf32>
    %11 = tpu.matmul %9, %10, %cst_8 {dimension_numbers = #tpu.dot_dimension_numbers<[1], [0], [0], [1], [0, 0, 1, 1], [], []>} : vector<8x32xbf16>, vector<32x12xbf16>, vector<8x12xf32> -> vector<8x12xf32>
    %c0_9 = arith.constant 0 : index
    %c0_10 = arith.constant 0 : index
    %12 = vector.load %arg6[%c0_9, %c0_10] : memref<1x12xf32, #tpu.memory_space<vmem>>, vector<1x12xf32>
    %13 = vector.broadcast %12 : vector<1x12xf32> to vector<8x12xf32>
    %14 = arith.addf %11, %13 : vector<8x12xf32>
    %15 = tpu.iota {dimensions = array<i32: 1>} : vector<8x12xi32>
    %c0_11 = arith.constant 0 : index
    %c0_12 = arith.constant 0 : index
    %16 = vector.load %arg1[%c0_11, %c0_12] : memref<8x1xi32, #tpu.memory_space<vmem>>, vector<8x1xi32>
    %17 = vector.broadcast %16 : vector<8x1xi32> to vector<8x12xi32>
    %18 = arith.cmpi sge, %15, %17 : vector<8x12xi32>
    %cst_13 = arith.constant -1.000000e+30 : f32
    %19 = vector.broadcast %cst_13 : f32 to vector<8x12xf32>
    %20 = arith.select %18, %19, %14 : vector<8x12xi1>, vector<8x12xf32>
    %cst_14 = arith.constant dense<0xFF800000> : vector<8xf32>
    %21 = vector.multi_reduction <maximumf>, %20, %cst_14 [1] : vector<8x12xf32> to vector<8xf32>
    %22 = vector.shape_cast %21 : vector<8xf32> to vector<8x1xf32>
    %23 = vector.broadcast %22 : vector<8x1xf32> to vector<8x12xf32>
    %24 = arith.subf %20, %23 : vector<8x12xf32>
    %25 = math.exp %24 : vector<8x12xf32>
    %cst_15 = arith.constant dense<0.000000e+00> : vector<8xf32>
    %26 = vector.multi_reduction <add>, %25, %cst_15 [1] : vector<8x12xf32> to vector<8xf32>
    %27 = vector.shape_cast %26 : vector<8xf32> to vector<8x1xf32>
    %28 = vector.broadcast %27 : vector<8x1xf32> to vector<8x12xf32>
    %29 = arith.divf %25, %28 : vector<8x12xf32>
    %c0_16 = arith.constant 0 : index
    %c0_17 = arith.constant 0 : index
    %30 = vector.load %arg7[%c0_16, %c0_17] : memref<8x12xf32, #tpu.memory_space<vmem>>, vector<8x12xf32>
    tpu.vector_store %arg7[%c0_16, %c0_17], %29 {strides = array<i32>} : memref<8x12xf32, #tpu.memory_space<vmem>>, vector<8x12xf32>,
    return
  }
  func.func @transform_0(%arg0: i32) -> (i32, i32) {
    %c0_i32 = arith.constant 0 : i32
    %c0_i32_0 = arith.constant 0 : i32
    return %arg0, %c0_i32 : i32, i32
  }
  func.func @transform_1(%arg0: i32) -> (i32, i32) {
    %c0_i32 = arith.constant 0 : i32
    %c0_i32_0 = arith.constant 0 : i32
    return %arg0, %c0_i32 : i32, i32
  }
  func.func @transform_2(%arg0: i32) -> (i32, i32) {
    %c0_i32 = arith.constant 0 : i32
    %c0_i32_0 = arith.constant 0 : i32
    %c0_i32_1 = arith.constant 0 : i32
    return %c0_i32, %c0_i32_0 : i32, i32
  }
  func.func @transform_3(%arg0: i32) -> (i32, i32) {
    %c0_i32 = arith.constant 0 : i32
    %c0_i32_0 = arith.constant 0 : i32
    %c0_i32_1 = arith.constant 0 : i32
    return %c0_i32, %c0_i32_0 : i32, i32
  }
  func.func @transform_4(%arg0: i32) -> (i32, i32) {
    %c0_i32 = arith.constant 0 : i32
    %c0_i32_0 = arith.constant 0 : i32
    %c0_i32_1 = arith.constant 0 : i32
    return %c0_i32, %c0_i32_0 : i32, i32
  }
  func.func @transform_5(%arg0: i32) -> (i32, i32) {
    %c0_i32 = arith.constant 0 : i32
    %c0_i32_0 = arith.constant 0 : i32
    %c0_i32_1 = arith.constant 0 : i32
    return %c0_i32, %c0_i32_0 : i32, i32
  }
  func.func @transform_6(%arg0: i32) -> (i32, i32) {
    %c0_i32 = arith.constant 0 : i32
    %c0_i32_0 = arith.constant 0 : i32
    return %arg0, %c0_i32 : i32, i32
  }
}

</mosaic_0001>

<bundles_post_ra>
// kernel: tpu_custom_call.1
= control target key start
LH: loop header
LB: loop body
LE: loop exit
PB: predicated region body
PF: predicated region fallthrough
CT: control target
= control target key end

     0   :  { %s261_s0 = inlined_call_operand.vmem [shape: s32[8,1], index: 0, kind: input, shape index: {}]   ;;  %s262_s1 = inlined_call_operand.vmem [shape: f32[8,16], index: 1, kind: input, shape index: {}]   ;;  %s263_s2 = inlined_call_operand.vmem [shape: bf16[16,32], index: 2, kind: input, shape index: {}]   ;;  %s264_s3 = inlined_call_operand.vmem [shape: f32[1,32], index: 3, kind: input, shape index: {}]   ;;  %s265_s4 = inlined_call_operand.vmem [shape: bf16[32,12], index: 4, kind: input, shape index: {}]   ;;  %s266_s5 = inlined_call_operand.vmem [shape: f32[1,12], index: 5, kind: input, shape index: {}]   ;;  %s267_s6 = inlined_call_operand.hbm [shape: f32[8,12], index: 6, kind: output, shape index: {}]  }
   0x1   :  { %v159_v0 = vld [vmem:[%s263_s2] sm:$0xff] }
   0x2   :  { %v25_v1 = vld [vmem:[%s262_s1] sm:$0xff] }
   0x3   :  { %v26_v2 = vpack.c.bf16 %v25_v1, %v25_v1 }
   0x4   :  { %11 = vsyncpa [#allocation3], 0  ;;  %50 = vmatpush.bf16.msra.mxu0 %v159_v0  ;;  %vm39_vm0 = vcmask 130048   ;;  %v161_v3 = vld [vmem:[%s265_s4 + $0x8] sm:$0xff]  ;;  %v160_v4 = vld [vmem:[%s265_s4] sm:$0xff]  ;;  %v197_v6 = vmov 0   ;;  %v95_v13 = vlaneseq }
   0x5   :  { %88 = vmatpush.bf16.msra.mxu1 %v161_v3  ;;  %v97_v5 = vld [vmem:[%s261_s0] sm:$0xff]  ;;  %164 = vset.pattern.permute.xlu0 %v197_v6  ;;  %vm78_vm1 = vcmask 261120   ;;  %vm103_vm3 = vcmask 97280   ;;  %s198_s0 = smov [#allocation2]   ;;  %s136_s9 = sshll.u32 %s267_s6, 4  ;;  %s137_s9 = int_to_ptr.hbm [resolvable:$true] %s136_s9 }
   0x6   :  { %99 = vperm.xlu0 %164, %v97_v5   ;;  %v165_v7 = vld [vmem:[%s264_s3] ss:$0 sm:$0xff]  ;;  %v96_v14 = vand.u32 127, %v95_v13  ;;  %s134_s3 = sshll.u32 %s198_s0, 4  ;;  %s135_s3 = int_to_ptr.vmem [resolvable:$true] %s134_s3 }
   0x7   :  { %149 = vmatmul.msk.bf16.vlgmr.msra.gmra.mxu0 %vm39_vm0, %v26_v2  ;;  %v166_v15 = vld [vmem:[%s266_s5] ss:$0 sm:$0xff] }
   0x9   :  { %89 = vmatpush.bf16.msra.mxu1 %v160_v4 }
  0x78   :  { %v100_v16 = vpop.permute.xlu0 %99 }
  0x79   :  { %vm101_vm2 = vcmp.ge.s32.totalorder %v96_v14, %v100_v16 }
  0x84   :  { %v52_v8 = vpop.f32.mrf.mxu0 }
  0x85   :  { %v53_v9 = vadd.f32 %v165_v7, %v52_v8 }
  0x87   :  { %v56_v10 = vmax.f32 %v53_v9, 0.0 }
  0x89   :  { %v57_v11 = vpack.c.bf16 %v56_v10, %v56_v10 }
  0x8b   :  { %158 = vmatmul.msk.bf16.vlgmr.msra.gmra.mxu1 %vm78_vm1, %v57_v11 }
  0x8c   :  { %v54_v12 = vpop.f32.mrf.mxu0 }
 0x108   :  { %v91_v17 = vpop.f32.mrf.mxu1 }
 0x109   :  { %v92_v18 = vadd.f32 %v166_v15, %v91_v17 }
 0x10b   :  { %v102_v19 = vsel %vm101_vm2, -1e+30, %v92_v18 }
 0x10c   :  { %v104_v20 = vsel %vm103_vm3, %v102_v19, -inf }
 0x10d   :  { %105 = vmax.xlane.f32.xlu0 %v104_v20 }
 0x110   :  { %v93_v21 = vpop.f32.mrf.mxu1 }
 0x180   :  { %v106_v22 = vpop.xlane.xlu0 %105 }
 0x181   :  { %v107_v23 = vsub.f32 %v102_v19, %v106_v22 }
 0x183   :  { %v108_v24 = vmul.f32 1.442695, %v107_v23 }
 0x185   :  { %167 = vpow2.f32 %v108_v24 }
 0x18b   :  { %v168_v25 = vpop.eup %167 }
 0x18c   :  { %v110_v26 = vsel %vm103_vm3, %v168_v25, 0.0 }
 0x18d   :  { %111 = vadd.xlane.f32.xlu1 %v110_v26 }
 0x200   :  { %v112_v27 = vpop.xlane.xlu1 %111 }
 0x201   :  { %169 = vrcp.f32 %v112_v27  ;;  %v124_v31 = vand.u32 2147483648, %v112_v27  ;;  %v122_v33 = vand.u32 2147483647, %v112_v27  ;;  %vm118_vm5 = vweird.f32 %v112_v27 }
 0x203   :  { %v125_v35 = vor.u32 1.1754944e-38, %v124_v31  ;;  %vm123_vm7 = vcmp.eq.f32.partialorder %v122_v33, 8.507059e+37 }
 0x207   :  { %v170_v28 = vpop.eup %169 }
 0x208   :  { %v114_v29 = vmul.f32 %v170_v28, %v112_v27  ;;  %vm119_vm4 = vweird.f32 %v170_v28 }
 0x209   :  { %vm120_vm6 = vmor %vm118_vm5, %vm119_vm4 }
 0x20a   :  { %v115_v30 = vsub.f32 1.0, %v114_v29 }
 0x20c   :  { %v116_v32 = vmul.f32 %v170_v28, %v115_v30 }
 0x20e   :  { %v117_v34 = vadd.f32 %v170_v28, %v116_v32 }
 0x210   :  { %v121_v36 = vsel %vm120_vm6, %v170_v28, %v117_v34 }
 0x211   :  { %v126_v37 = vsel %vm123_vm7, %v125_v35, %v121_v36 }
 0x212   :  { %v127_v38 = vmul.f32 %v168_v25, %v126_v37 }
 0x214   :  { %128 = vst.msk [vmem:[#allocation2] sm:$0xff] %vm103_vm3, %v127_v38 }
 0x215   :  { %139 = dma.vmem_to_hbm [thread:$0]  %s135_s3, 128, %s137_s9, [#allocation3]  }
 0x216   :  { %195 = dma.done.wait [#allocation3], 128  }
 0x217   :  { %196 = vsyncadd [#allocation3], 4294967168 }
 0x218   :  { %144 = vsyncpa [#allocation3], 1 }

</bundles_post_ra>
